<compile_context>
chip_gen: v6e
topology: v6e:2x2x1
jax: 0.10.0
libtpu: 0.0.40
codegen_flags: <defaults>
</compile_context>

<pallas_src>
import jax
import jax.numpy as jnp
from jax.experimental import pallas as pl
from jax.experimental.pallas import tpu as pltpu


OUT_PAD = 128  # lane-dense padded out_features (one full lane group)


def _linear_kernel(x_ref, w_ref, b_ref, o_ref):
    # x_ref: (B, in_f)          float32
    # w_ref: (in_f, OUT_PAD)    float32  canonical (K, N) MXU layout, zero-padded cols
    # b_ref: (1, OUT_PAD)       float32  zero-padded
    # o_ref: (B, OUT_PAD)       float32  lane-dense
    acc = jnp.dot(x_ref[...], w_ref[...], preferred_element_type=jnp.float32)
    o_ref[...] = (acc + b_ref[...]).astype(o_ref.dtype)


def linear_pallas(x, w_kn_padded, b_padded):
    """y_padded = x @ w_kn_padded + b_padded, all operands resident in VMEM.

    x:           (B, in_features)        float32
    w_kn_padded: (in_features, OUT_PAD)  float32  (pre-transposed, zero padded)
    b_padded:    (1, OUT_PAD)            float32  (zero padded)
    returns:     (B, OUT_PAD)            float32  (cols >= out_features are 0)
    """
    B, in_f = x.shape
    out_pad = w_kn_padded.shape[1]

    vmem = pltpu.MemorySpace.VMEM
    cost = pl.CostEstimate(
        flops=2 * B * in_f * out_pad,
        bytes_accessed=(B * in_f + in_f * out_pad + out_pad + B * out_pad) * 4,
        transcendentals=0,
    )
    return pl.pallas_call(
        _linear_kernel,
        out_shape=jax.ShapeDtypeStruct((B, out_pad), x.dtype),
        in_specs=[
            pl.BlockSpec(memory_space=vmem),   # x
            pl.BlockSpec(memory_space=vmem),   # weight (K, N) padded
            pl.BlockSpec(memory_space=vmem),   # bias (1, N) padded
        ],
        out_specs=pl.BlockSpec(memory_space=vmem),
        cost_estimate=cost,
    )(x, w_kn_padded, b_padded)


if __name__ == "__main__":
    key = jax.random.PRNGKey(0)
    k_x, k_w, k_b = jax.random.split(key, 3)

    B, in_f, out_f = 8, 10, 10

    # Deterministic parameter init, matching nn.Linear's U(-1/sqrt(in), 1/sqrt(in)).
    bound = 1.0 / (in_f ** 0.5)
    weight = jax.random.uniform(k_w, (out_f, in_f), jnp.float32, -bound, bound)
    bias = jax.random.uniform(k_b, (out_f,), jnp.float32, -bound, bound)

    x = jax.random.normal(k_x, (B, in_f), jnp.float32)

    # Parameter prep (done ONCE, not per-call): pre-transpose to (K, N) and pad
    # out_features 10 -> 128.  K is left at 10 on purpose.
    w_kn_padded = (
        jnp.zeros((in_f, OUT_PAD), jnp.float32).at[:, :out_f].set(weight.T)
    )
    b_padded = jnp.zeros((1, OUT_PAD), jnp.float32).at[0, :out_f].set(bias)

    y_padded = linear_pallas(x, w_kn_padded, b_padded)
    jax.block_until_ready(y_padded)

    # Correctness check only (not part of the hot path): slice off padded cols
    # and compare against plain JAX (same math as PyTorch's fc(x)).
    y = y_padded[:, :out_f]
    y_ref = x @ weight.T + bias
    assert jnp.allclose(y, y_ref, atol=1e-5, rtol=1e-5), "mismatch vs reference"
    # Padded columns must be exactly zero.
    assert jnp.all(y_padded[:, out_f:] == 0.0), "padded columns not zero"

    print("KERNEL_OK")
</pallas_src>

<mosaic_0001>
module attributes {stable_mosaic.version = 11 : i64} {
  func.func @_linear_kernel(%arg0: memref<8x10xf32, #tpu.memory_space<vmem>>, %arg1: memref<10x128xf32, #tpu.memory_space<vmem>>, %arg2: memref<1x128xf32, #tpu.memory_space<vmem>>, %arg3: memref<8x128xf32, #tpu.memory_space<vmem>>) attributes {dimension_semantics = [], scalar_prefetch = 0 : i64, scratch_operands = 0 : i64, tpu.core_type = #tpu.core_type<tc>} {
    %c0 = arith.constant 0 : index
    %c0_0 = arith.constant 0 : index
    %0 = vector.load %arg0[%c0, %c0_0] : memref<8x10xf32, #tpu.memory_space<vmem>>, vector<8x10xf32>
    %c0_1 = arith.constant 0 : index
    %c0_2 = arith.constant 0 : index
    %1 = vector.load %arg1[%c0_1, %c0_2] : memref<10x128xf32, #tpu.memory_space<vmem>>, vector<10x128xf32>
    %cst = arith.constant dense<0.000000e+00> : vector<8x128xf32>
    %2 = tpu.matmul %0, %1, %cst {dimension_numbers = #tpu.dot_dimension_numbers<[1], [0], [0], [1], [0, 0, 1, 1], [], []>} : vector<8x10xf32>, vector<10x128xf32>, vector<8x128xf32> -> vector<8x128xf32>
    %c0_3 = arith.constant 0 : index
    %c0_4 = arith.constant 0 : index
    %3 = vector.load %arg2[%c0_3, %c0_4] : memref<1x128xf32, #tpu.memory_space<vmem>>, vector<1x128xf32>
    %4 = vector.broadcast %3 : vector<1x128xf32> to vector<8x128xf32>
    %5 = arith.addf %2, %4 : vector<8x128xf32>
    %c0_5 = arith.constant 0 : index
    %c0_6 = arith.constant 0 : index
    %6 = vector.load %arg3[%c0_5, %c0_6] : memref<8x128xf32, #tpu.memory_space<vmem>>, vector<8x128xf32>
    tpu.vector_store %arg3[%c0_5, %c0_6], %5 {strides = array<i32>} : memref<8x128xf32, #tpu.memory_space<vmem>>, vector<8x128xf32>,
    return
  }
}

</mosaic_0001>

<bundles_post_ra>
// kernel: tpu_custom_call.1
= control target key start
LH: loop header
LB: loop body
LE: loop exit
PB: predicated region body
PF: predicated region fallthrough
CT: control target
= control target key end

     0   :  { %8 = vsyncpa [#allocation3], 0  ;;  %s271_s0 = inlined_call_operand.hbm [shape: f32[8,10], index: 0, kind: input, shape index: {}]   ;;  %s272_s1 = inlined_call_operand.hbm [shape: f32[10,128], index: 1, kind: input, shape index: {}]   ;;  %s273_s2 = inlined_call_operand.vmem [shape: f32[1,128], index: 2, kind: input, shape index: {}]   ;;  %s274_s3 = inlined_call_operand.hbm [shape: f32[8,128], index: 3, kind: output, shape index: {}]  }
   0x1   :  { %9 = vsyncpa [#allocation6], 0 }
   0x2   :  { %10 = vsyncpa [#allocation4], 0  ;;  %s232_s12 = smov [#allocation2]   ;;  %s233_s14 = smov [#allocation5]  }
   0x3   :  { %s17_s13 = sshll.u32 %s232_s12, 4  ;;  %s26_s15 = sshll.u32 %s233_s14, 4  ;;  %s18_s13 = int_to_ptr.vmem [resolvable:$true] %s17_s13  ;;  %s27_s15 = int_to_ptr.vmem [resolvable:$true] %s26_s15 }
   0x4   :  { %s174_s16 = scalar_lea.vmem %s18_s13, 128  ;;  %p179_p1 = scmp.lt.s32.totalorder %s18_s13, %s18_s13 }
   0x5   :  { %p175_p0 = scmp.ne.s32.totalorder %s18_s13, %s174_s16  ;;  %p180_p2 = scmp.lt.s32.totalorder %s174_s16, %s174_s16 }
   0x7   :  { %p181_p3 = por %p180_p2, %p179_p1 }
   0x9   :  { %p182_p4 = pnand %p181_p3, %p175_p0 }
   0xb   :  { %185 = shalt.err (!%p182_p4)
}
   0xc   :  { %20 = dma.hbm_to_vmem [thread:$0]  %s271_s0, 128, %s18_s13, [#allocation3]  }
   0xd   :  { %s194_s19 = scalar_lea.vmem %s27_s15, 256  ;;  %p199_p6 = scmp.lt.s32.totalorder %s27_s15, %s27_s15 }
   0xe   :  { %p195_p5 = scmp.ne.s32.totalorder %s27_s15, %s194_s19  ;;  %p200_p7 = scmp.lt.s32.totalorder %s194_s19, %s194_s19 }
  0x10   :  { %p201_p8 = por %p200_p7, %p199_p6 }
  0x12   :  { %p202_p9 = pnand %p201_p8, %p195_p5 }
  0x14   :  { %205 = shalt.err (!%p202_p9)
}
  0x15   :  { %s234_s20 = smov 128   ;;  %s235_s21 = smov 8  }
  0x16   :  { %32 = dma.hbm_to_vmem [thread:$0]  %s272_s1, 256, %s27_s15, [#allocation6], %s234_s20, %s234_s20, %s235_s21  }
  0x17   :  { %226 = dma.done.wait [#allocation3], 128  }
  0x18   :  { %227 = vsyncadd [#allocation3], 4294967168 }
  0x19   :  { %228 = dma.done.wait [#allocation6], 256  }
  0x1a   :  { %229 = vsyncadd [#allocation6], 4294967040  ;;  %v236_v0 = vmov 0.0   ;;  %vm237_vm0 = vmmov 0   ;;  %vm55_vm1 = vcmask 1041408   ;;  %v42_v2 = vld [vmem:[#allocation5] sm:$0xff] }
  0x1b   :  { %152 = vmatprep.subr.mxu0 %v236_v0  ;;  %156 = vmatprep.mubr.msk.f32.mxu0 %vm237_vm0, %v236_v0  ;;  %v43_v1 = vld [vmem:[#allocation5 + $0x8] sm:$0x3]  ;;  %v41_v3 = vld [vmem:[#allocation2] sm:$0xff]  ;;  %vm51_vm2 = vcmask 80896   ;;  %s238_s1 = smov [#allocation7]  }
  0x1c   :  { %153 = vmatpush3.msk.msra.mxu0 %vm55_vm1, %v43_v1  ;;  %v146_v4 = vld [vmem:[%s273_s2] ss:$0 sm:$0xff]  ;;  %s136_s25 = sshll.u32 %s238_s1, 4  ;;  %s137_s25 = int_to_ptr.vmem [resolvable:$true] %s136_s25 }
  0x1d   :  { %154 = vmatprep.subr.mxu0 %v236_v0  ;;  %s206_s26 = scalar_lea.vmem %s137_s25, 128  ;;  %p211_p11 = scmp.lt.s32.totalorder %s137_s25, %s137_s25 }
  0x1e   :  { %155 = vmatpush3.msra.mxu0 %v42_v2  ;;  %p207_p10 = scmp.ne.s32.totalorder %s137_s25, %s206_s26  ;;  %p212_p12 = scmp.lt.s32.totalorder %s206_s26, %s206_s26 }
  0x1f   :  { %157 = vmatmul.mubr.msk.f32.vlgmr.msra.gmra.mxu0 %vm51_vm2, %v41_v3 }
  0x20   :  { %p213_p13 = por %p212_p12, %p211_p11 }
  0x22   :  { %p214_p0 = pnand %p213_p13, %p207_p10 }
  0xdf   :  { %v125_v5 = vpop.f32.mrf.mxu0 }
  0xe0   :  { %v126_v6 = vadd.f32 %v146_v4, %v125_v5 }
  0xe1   :  { %v158_v7 = vpop.f32.mrf.mxu0 }
  0xe2   :  { %129 = vst [vmem:[#allocation7] sm:$0xff] %v126_v6 }
  0xe3   :  { %217 = shalt.err (!%p214_p0)
}
  0xe4   :  { %139 = dma.vmem_to_hbm [thread:$0]  %s137_s25, 128, %s274_s3, [#allocation4]  }
  0xe5   :  { %230 = dma.done.wait [#allocation4], 128  }
  0xe6   :  { %231 = vsyncadd [#allocation4], 4294967168 }
  0xe7   :  { %143 = vsyncpa [#allocation3], 1 }
  0xe8   :  { %144 = vsyncpa [#allocation6], 1 }
  0xe9   :  { %145 = vsyncpa [#allocation4], 1 }

</bundles_post_ra>
